<compile_context>
chip_gen: v6e
topology: v6e:2x2x1
jax: 0.10.0
libtpu: 0.0.40
codegen_flags: <defaults>
</compile_context>

<pallas_src>
import functools

import jax
import jax.numpy as jnp
from jax.experimental import pallas as pl
from jax.experimental.pallas import tpu as pltpu

# ---- model hyperparameters (from the PyTorch __init__) ----------------------
INPUT_DIM = 5
D_MODEL = 16
NHEAD = 2
HEAD_DIM = D_MODEL // NHEAD      # 8
D_FF = D_MODEL * 4               # 64
OUTPUT_DIM = 1
LN_EPS = 1e-5
CHUNK = 1000

# ---- packed parameter-slab layout -------------------------------------------
# weight slab (W_ROWS, 64): each matrix starts at an 8-aligned row, columns
# left-aligned and zero padded.  Matrices stored in "y = x @ W" orientation.
RO_W_IN, RO_W_QKV, RO_W_O, RO_W1, RO_W2 = 0, 8, 24, 40, 56
W_ROWS, W_COLS = 120, 64

# bias/param slab (B_ROWS, 64): one parameter vector per row.
(R_B_IN, R_B_QKV, R_B_O, R_LN1W, R_LN1B,
 R_B1, R_B2, R_LN2W, R_LN2B, R_B_OUT, R_W_OUT) = range(11)
B_ROWS = 16


# ---- Pallas kernel -----------------------------------------------------------
def transformer_kernel(x_ref, w_ref, b_ref, out_ref, *, b_blk, s_pad, s_valid):
    n = b_blk * s_pad
    x = x_ref[...]                                            # (n, INPUT_DIM)

    # input projection: (n, D_MODEL)
    h = jnp.dot(x, w_ref[RO_W_IN:RO_W_IN + INPUT_DIM, 0:D_MODEL],
                preferred_element_type=jnp.float32)
    h = h + b_ref[R_B_IN:R_B_IN + 1, 0:D_MODEL]

    # fused QKV projection: (n, 3*D_MODEL).  Q part is pre-scaled by
    # 1/sqrt(HEAD_DIM) at packing time.
    qkv = jnp.dot(h, w_ref[RO_W_QKV:RO_W_QKV + D_MODEL, 0:3 * D_MODEL],
                  preferred_element_type=jnp.float32)
    qkv = qkv + b_ref[R_B_QKV:R_B_QKV + 1, 0:3 * D_MODEL]

    # multi-head self-attention, batched over the B_BLK sequences per head
    head_outs = []
    for hd in range(NHEAD):
        c = hd * HEAD_DIM
        q = qkv[:, c:c + HEAD_DIM].reshape(b_blk, s_pad, HEAD_DIM)
        k = qkv[:, D_MODEL + c:D_MODEL + c + HEAD_DIM].reshape(
            b_blk, s_pad, HEAD_DIM)
        v = qkv[:, 2 * D_MODEL + c:2 * D_MODEL + c + HEAD_DIM].reshape(
            b_blk, s_pad, HEAD_DIM)
        s = jnp.einsum("bqd,bkd->bqk", q, k,
                       preferred_element_type=jnp.float32)
        if s_valid < s_pad:  # static branch: mask padded key positions
            key_ok = jax.lax.broadcasted_iota(
                jnp.int32, (b_blk, s_pad, s_pad), 2) < s_valid
            s = jnp.where(key_ok, s, -1e30)
        s = s - jnp.max(s, axis=-1, keepdims=True)
        p = jnp.exp(s)
        p = p * pl.reciprocal(jnp.sum(p, axis=-1, keepdims=True), approx=False)
        a = jnp.einsum("bqk,bkd->bqd", p, v,
                       preferred_element_type=jnp.float32)    # (b_blk,S,HD)
        head_outs.append(a.reshape(n, HEAD_DIM))
    a_cat = jnp.concatenate(head_outs, axis=-1)               # (n, D_MODEL)

    attn = jnp.dot(a_cat, w_ref[RO_W_O:RO_W_O + D_MODEL, 0:D_MODEL],
                   preferred_element_type=jnp.float32)
    attn = attn + b_ref[R_B_O:R_B_O + 1, 0:D_MODEL]
    # dropout omitted (eval-mode semantics)

    # residual + LayerNorm 1 (post-LN, biased variance, eps=1e-5)
    x1 = h + attn
    mu1 = jnp.mean(x1, axis=-1, keepdims=True)
    var1 = jnp.mean((x1 - mu1) ** 2, axis=-1, keepdims=True)
    x1n = ((x1 - mu1) * jax.lax.rsqrt(var1 + LN_EPS)
           * b_ref[R_LN1W:R_LN1W + 1, 0:D_MODEL]
           + b_ref[R_LN1B:R_LN1B + 1, 0:D_MODEL])

    # feed-forward (ReLU)
    f = jnp.dot(x1n, w_ref[RO_W1:RO_W1 + D_MODEL, 0:D_FF],
                preferred_element_type=jnp.float32) + b_ref[R_B1:R_B1 + 1, 0:D_FF]
    f = jnp.maximum(f, 0.0)
    f = jnp.dot(f, w_ref[RO_W2:RO_W2 + D_FF, 0:D_MODEL],
                preferred_element_type=jnp.float32) + b_ref[R_B2:R_B2 + 1, 0:D_MODEL]

    # residual + LayerNorm 2
    x2 = x1n + f
    mu2 = jnp.mean(x2, axis=-1, keepdims=True)
    var2 = jnp.mean((x2 - mu2) ** 2, axis=-1, keepdims=True)
    x2n = ((x2 - mu2) * jax.lax.rsqrt(var2 + LN_EPS)
           * b_ref[R_LN2W:R_LN2W + 1, 0:D_MODEL]
           + b_ref[R_LN2B:R_LN2B + 1, 0:D_MODEL])

    # output projection, lane-dense: (1, n) with rows on the lane axis
    w_out_row = b_ref[R_W_OUT:R_W_OUT + 1, 0:D_MODEL]          # (1, D_MODEL)
    out_1n = jnp.einsum("od,nd->on", w_out_row, x2n,
                        preferred_element_type=jnp.float32)    # (1, n)
    out_ref[0] = out_1n + b_ref[R_B_OUT:R_B_OUT + 1, 0:1]


# ---- wrapper (one <=1000-token chunk) -----------------------------------------
@functools.partial(jax.jit, static_argnames=())
def _encode_chunk(x, w_slab, b_slab):
    B, S, _ = x.shape
    s_pad = ((S + 7) // 8) * 8                       # sequence rows 8-aligned
    b_blk = max(1, min(B, 512 // s_pad))             # ~512 rows per matmul slab
    num_blocks = -(-B // b_blk)
    if num_blocks < 2 and B >= 2:                    # keep >=2 steps (v7x 2 TCs)
        b_blk = -(-B // 2)
        num_blocks = -(-B // b_blk)
    b_pad = num_blocks * b_blk
    n = b_blk * s_pad

    xp = x
    if (b_pad, s_pad) != (B, S):
        xp = jnp.pad(x, ((0, b_pad - B), (0, s_pad - S), (0, 0)))
    xf = xp.reshape(b_pad * s_pad, INPUT_DIM)

    kernel = functools.partial(transformer_kernel,
                               b_blk=b_blk, s_pad=s_pad, s_valid=S)
    out = pl.pallas_call(
        kernel,
        out_shape=jax.ShapeDtypeStruct((num_blocks, 1, n), jnp.float32),
        grid_spec=pltpu.PrefetchScalarGridSpec(
            num_scalar_prefetch=0,
            grid=(num_blocks,),
            in_specs=[
                pl.BlockSpec((n, INPUT_DIM), lambda i: (i, 0)),
                pl.BlockSpec((W_ROWS, W_COLS), lambda i: (0, 0)),
                pl.BlockSpec((B_ROWS, W_COLS), lambda i: (0, 0)),
            ],
            out_specs=pl.BlockSpec((1, 1, n), lambda i: (i, 0, 0)),
        ),
        compiler_params=pltpu.CompilerParams(
            dimension_semantics=("parallel",),
            vmem_limit_bytes=32 * 1024 * 1024,
        ),
    )(xf, w_slab, b_slab)

    return out.reshape(b_pad, s_pad)[:B, :S].reshape(B, S, OUTPUT_DIM)


def transformer_forward(x, params):
    """Full forward, including the >1000-token per-chunk branch of forward()."""
    B, S, _ = x.shape
    w_slab, b_slab = params["w_slab"], params["b_slab"]
    if S <= CHUNK:
        return _encode_chunk(x, w_slab, b_slab)
    outs = []
    for i in range(0, S, CHUNK):
        outs.append(_encode_chunk(x[:, i:i + CHUNK, :], w_slab, b_slab))
    return jnp.concatenate(outs, axis=1)


# ---- deterministic parameter construction ------------------------------------
def make_params(key):
    ks = jax.random.split(key, 16)

    def rnd(k, shape, scale=0.1):
        return jax.random.normal(k, shape, dtype=jnp.float32) * scale

    # PyTorch-layout (out, in) weights
    w_in = rnd(ks[0], (D_MODEL, INPUT_DIM)); b_in = rnd(ks[1], (D_MODEL,))
    w_q = rnd(ks[2], (D_MODEL, D_MODEL)); w_k = rnd(ks[3], (D_MODEL, D_MODEL))
    w_v = rnd(ks[4], (D_MODEL, D_MODEL))
    b_q = rnd(ks[5], (D_MODEL,)); b_k = rnd(ks[6], (D_MODEL,)); b_v = rnd(ks[7], (D_MODEL,))
    w_o = rnd(ks[8], (D_MODEL, D_MODEL)); b_o = rnd(ks[9], (D_MODEL,))
    w1 = rnd(ks[10], (D_FF, D_MODEL)); b1 = rnd(ks[11], (D_FF,))
    w2 = rnd(ks[12], (D_MODEL, D_FF)); b2 = rnd(ks[13], (D_MODEL,))
    ln1_w = jnp.ones((D_MODEL,), jnp.float32); ln1_b = jnp.zeros((D_MODEL,), jnp.float32)
    ln2_w = jnp.ones((D_MODEL,), jnp.float32); ln2_b = jnp.zeros((D_MODEL,), jnp.float32)
    w_out = rnd(ks[14], (OUTPUT_DIM, D_MODEL)); b_out = rnd(ks[15], (OUTPUT_DIM,))

    scale = 1.0 / (float(HEAD_DIM) ** 0.5)

    # ---- pack weight slab (W_ROWS, 64), y = x @ W orientation
    w_slab = jnp.zeros((W_ROWS, W_COLS), jnp.float32)

    def place(slab, row0, mat):
        r, c = mat.shape
        return slab.at[row0:row0 + r, 0:c].set(mat)

    w_slab = place(w_slab, RO_W_IN, w_in.T)                                  # (5,16)
    w_slab = place(w_slab, RO_W_QKV,
                   jnp.concatenate([w_q.T * scale, w_k.T, w_v.T], axis=1))   # (16,48)
    w_slab = place(w_slab, RO_W_O, w_o.T)                                    # (16,16)
    w_slab = place(w_slab, RO_W1, w1.T)                                      # (16,64)
    w_slab = place(w_slab, RO_W2, w2.T)                                      # (64,16)

    # ---- pack bias / LN / W_out slab (B_ROWS, 64)
    b_slab = jnp.zeros((B_ROWS, W_COLS), jnp.float32)
    rows = [b_in, jnp.concatenate([b_q * scale, b_k, b_v]), b_o, ln1_w, ln1_b,
            b1, b2, ln2_w, ln2_b, b_out, w_out[0]]
    for r, vec in enumerate(rows):
        b_slab = b_slab.at[r, 0:vec.shape[0]].set(vec)

    params = dict(w_slab=w_slab, b_slab=b_slab)
    raw = dict(w_in=w_in, b_in=b_in, w_q=w_q, w_k=w_k, w_v=w_v,
               b_q=b_q, b_k=b_k, b_v=b_v, w_o=w_o, b_o=b_o,
               w1=w1, b1=b1, w2=w2, b2=b2,
               ln1_w=ln1_w, ln1_b=ln1_b, ln2_w=ln2_w, ln2_b=ln2_b,
               w_out=w_out, b_out=b_out)
    return params, raw


# ---- pure-JAX reference (mirrors PyTorch eval-mode forward) -------------------
def reference_forward(x, r):
    def layernorm(v, w, b):
        mu = jnp.mean(v, axis=-1, keepdims=True)
        var = jnp.mean((v - mu) ** 2, axis=-1, keepdims=True)
        return (v - mu) * jax.lax.rsqrt(var + LN_EPS) * w + b

    h = x @ r["w_in"].T + r["b_in"]
    B, S, _ = h.shape
    q = (h @ r["w_q"].T + r["b_q"]).reshape(B, S, NHEAD, HEAD_DIM)
    k = (h @ r["w_k"].T + r["b_k"]).reshape(B, S, NHEAD, HEAD_DIM)
    v = (h @ r["w_v"].T + r["b_v"]).reshape(B, S, NHEAD, HEAD_DIM)
    s = jnp.einsum("bqhd,bkhd->bhqk", q, k) / jnp.sqrt(jnp.float32(HEAD_DIM))
    p = jax.nn.softmax(s, axis=-1)
    a = jnp.einsum("bhqk,bkhd->bqhd", p, v).reshape(B, S, D_MODEL)
    attn = a @ r["w_o"].T + r["b_o"]
    x1 = layernorm(h + attn, r["ln1_w"], r["ln1_b"])
    f = jax.nn.relu(x1 @ r["w1"].T + r["b1"]) @ r["w2"].T + r["b2"]
    x2 = layernorm(x1 + f, r["ln2_w"], r["ln2_b"])
    return x2 @ r["w_out"].T + r["b_out"]


if __name__ == "__main__":
    key = jax.random.PRNGKey(0)
    k_params, k_x = jax.random.split(key)
    params, raw = make_params(k_params)

    B, S = 8, 8
    x = jax.random.normal(k_x, (B, S, INPUT_DIM), dtype=jnp.float32)

    out = transformer_forward(x, params)
    out = jax.block_until_ready(out)

    ref = reference_forward(x, raw)
    assert out.shape == (B, S, OUTPUT_DIM)
    assert jnp.allclose(out, ref, rtol=1e-3, atol=1e-3)

    print("KERNEL_OK")
</pallas_src>

<mosaic_0001>
module attributes {stable_mosaic.version = 11 : i64} {
  func.func @transformer_kernel(%arg0: i32, %arg1: memref<32x5xf32, #tpu.memory_space<vmem>>, %arg2: memref<120x64xf32, #tpu.memory_space<vmem>>, %arg3: memref<16x64xf32, #tpu.memory_space<vmem>>, %arg4: memref<1x1x32xf32, #tpu.memory_space<vmem>>) attributes {dimension_semantics = [#tpu.dimension_semantics<parallel>], iteration_bounds = array<i64: 2>, scalar_prefetch = 0 : i64, scratch_operands = 0 : i64, tpu.core_type = #tpu.core_type<tc>, window_params = [{transform_indices = @transform_0, window_bounds = array<i64: 32, 5>}, {pipeline_mode = #tpu.pipeline_mode<synchronous>, transform_indices = @transform_1, window_bounds = array<i64: 120, 64>}, {pipeline_mode = #tpu.pipeline_mode<synchronous>, transform_indices = @transform_2, window_bounds = array<i64: 16, 64>}, {transform_indices = @transform_3, window_bounds = array<i64: 1, 1, 32>}]} {
    %c0 = arith.constant 0 : index
    %c0_0 = arith.constant 0 : index
    %0 = vector.load %arg1[%c0, %c0_0] : memref<32x5xf32, #tpu.memory_space<vmem>>, vector<32x5xf32>
    %c0_1 = arith.constant 0 : index
    %c0_2 = arith.constant 0 : index
    %1 = vector.load %arg2[%c0_1, %c0_2] : memref<120x64xf32, #tpu.memory_space<vmem>>, vector<5x16xf32>
    %cst = arith.constant dense<0.000000e+00> : vector<32x16xf32>
    %2 = tpu.matmul %0, %1, %cst {dimension_numbers = #tpu.dot_dimension_numbers<[1], [0], [0], [1], [0, 0, 1, 1], [], []>} : vector<32x5xf32>, vector<5x16xf32>, vector<32x16xf32> -> vector<32x16xf32>
    %c0_3 = arith.constant 0 : index
    %c0_4 = arith.constant 0 : index
    %3 = vector.load %arg3[%c0_3, %c0_4] : memref<16x64xf32, #tpu.memory_space<vmem>>, vector<1x16xf32>
    %4 = vector.broadcast %3 : vector<1x16xf32> to vector<32x16xf32>
    %5 = arith.addf %2, %4 : vector<32x16xf32>
    %c8 = arith.constant 8 : index
    %c0_5 = arith.constant 0 : index
    %6 = vector.load %arg2[%c8, %c0_5] : memref<120x64xf32, #tpu.memory_space<vmem>>, vector<16x48xf32>
    %cst_6 = arith.constant dense<0.000000e+00> : vector<32x48xf32>
    %7 = tpu.matmul %5, %6, %cst_6 {dimension_numbers = #tpu.dot_dimension_numbers<[1], [0], [0], [1], [0, 0, 1, 1], [], []>} : vector<32x16xf32>, vector<16x48xf32>, vector<32x48xf32> -> vector<32x48xf32>
    %c1 = arith.constant 1 : index
    %c0_7 = arith.constant 0 : index
    %8 = vector.load %arg3[%c1, %c0_7] : memref<16x64xf32, #tpu.memory_space<vmem>>, vector<1x48xf32>
    %9 = vector.broadcast %8 : vector<1x48xf32> to vector<32x48xf32>
    %10 = arith.addf %7, %9 : vector<32x48xf32>
    %11 = vector.extract_strided_slice %10 {offsets = [0, 0], sizes = [32, 8], strides = [1, 1]} : vector<32x48xf32> to vector<32x8xf32>
    %12 = vector.shape_cast %11 : vector<32x8xf32> to vector<4x8x8xf32>
    %13 = vector.extract_strided_slice %10 {offsets = [0, 16], sizes = [32, 8], strides = [1, 1]} : vector<32x48xf32> to vector<32x8xf32>
    %14 = vector.shape_cast %13 : vector<32x8xf32> to vector<4x8x8xf32>
    %15 = vector.extract_strided_slice %10 {offsets = [0, 32], sizes = [32, 8], strides = [1, 1]} : vector<32x48xf32> to vector<32x8xf32>
    %16 = vector.shape_cast %15 : vector<32x8xf32> to vector<4x8x8xf32>
    "tpu.trace_start"() <{level = 10 : i32, message = "bqd,bkd->bqk"}> : () -> ()
    %cst_8 = arith.constant dense<0.000000e+00> : vector<4x8x8xf32>
    %17 = tpu.matmul %12, %14, %cst_8 {dimension_numbers = #tpu.dot_dimension_numbers<[2], [2], [1], [1], [0, 0, 0, 1, 1, 1], [0], [0]>} : vector<4x8x8xf32>, vector<4x8x8xf32>, vector<4x8x8xf32> -> vector<4x8x8xf32>
    "tpu.trace_stop"() : () -> ()
    %cst_9 = arith.constant dense<0xFF800000> : vector<4x8xf32>
    %18 = vector.multi_reduction <maximumf>, %17, %cst_9 [2] : vector<4x8x8xf32> to vector<4x8xf32>
    %19 = vector.shape_cast %18 : vector<4x8xf32> to vector<4x8x1xf32>
    %20 = vector.broadcast %19 : vector<4x8x1xf32> to vector<4x8x8xf32>
    %21 = arith.subf %17, %20 : vector<4x8x8xf32>
    %22 = math.exp %21 : vector<4x8x8xf32>
    %cst_10 = arith.constant dense<0.000000e+00> : vector<4x8xf32>
    %23 = vector.multi_reduction <add>, %22, %cst_10 [2] : vector<4x8x8xf32> to vector<4x8xf32>
    %24 = vector.shape_cast %23 : vector<4x8xf32> to vector<4x8x1xf32>
    %25 = tpu.reciprocal %24 : vector<4x8x1xf32> -> vector<4x8x1xf32>
    %26 = vector.broadcast %25 : vector<4x8x1xf32> to vector<4x8x8xf32>
    %27 = arith.mulf %22, %26 : vector<4x8x8xf32>
    "tpu.trace_start"() <{level = 10 : i32, message = "bqk,bkd->bqd"}> : () -> ()
    %cst_11 = arith.constant dense<0.000000e+00> : vector<4x8x8xf32>
    %28 = tpu.matmul %27, %16, %cst_11 {dimension_numbers = #tpu.dot_dimension_numbers<[2], [1], [1], [2], [0, 0, 0, 1, 1, 2], [0], [0]>} : vector<4x8x8xf32>, vector<4x8x8xf32>, vector<4x8x8xf32> -> vector<4x8x8xf32>
    "tpu.trace_stop"() : () -> ()
    %29 = vector.shape_cast %28 : vector<4x8x8xf32> to vector<32x8xf32>
    %30 = vector.extract_strided_slice %10 {offsets = [0, 8], sizes = [32, 8], strides = [1, 1]} : vector<32x48xf32> to vector<32x8xf32>
    %31 = vector.shape_cast %30 : vector<32x8xf32> to vector<4x8x8xf32>
    %32 = vector.extract_strided_slice %10 {offsets = [0, 24], sizes = [32, 8], strides = [1, 1]} : vector<32x48xf32> to vector<32x8xf32>
    %33 = vector.shape_cast %32 : vector<32x8xf32> to vector<4x8x8xf32>
    %34 = vector.extract_strided_slice %10 {offsets = [0, 40], sizes = [32, 8], strides = [1, 1]} : vector<32x48xf32> to vector<32x8xf32>
    %35 = vector.shape_cast %34 : vector<32x8xf32> to vector<4x8x8xf32>
    "tpu.trace_start"() <{level = 10 : i32, message = "bqd,bkd->bqk"}> : () -> ()
    %cst_12 = arith.constant dense<0.000000e+00> : vector<4x8x8xf32>
    %36 = tpu.matmul %31, %33, %cst_12 {dimension_numbers = #tpu.dot_dimension_numbers<[2], [2], [1], [1], [0, 0, 0, 1, 1, 1], [0], [0]>} : vector<4x8x8xf32>, vector<4x8x8xf32>, vector<4x8x8xf32> -> vector<4x8x8xf32>
    "tpu.trace_stop"() : () -> ()
    %cst_13 = arith.constant dense<0xFF800000> : vector<4x8xf32>
    %37 = vector.multi_reduction <maximumf>, %36, %cst_13 [2] : vector<4x8x8xf32> to vector<4x8xf32>
    %38 = vector.shape_cast %37 : vector<4x8xf32> to vector<4x8x1xf32>
    %39 = vector.broadcast %38 : vector<4x8x1xf32> to vector<4x8x8xf32>
    %40 = arith.subf %36, %39 : vector<4x8x8xf32>
    %41 = math.exp %40 : vector<4x8x8xf32>
    %cst_14 = arith.constant dense<0.000000e+00> : vector<4x8xf32>
    %42 = vector.multi_reduction <add>, %41, %cst_14 [2] : vector<4x8x8xf32> to vector<4x8xf32>
    %43 = vector.shape_cast %42 : vector<4x8xf32> to vector<4x8x1xf32>
    %44 = tpu.reciprocal %43 : vector<4x8x1xf32> -> vector<4x8x1xf32>
    %45 = vector.broadcast %44 : vector<4x8x1xf32> to vector<4x8x8xf32>
    %46 = arith.mulf %41, %45 : vector<4x8x8xf32>
    "tpu.trace_start"() <{level = 10 : i32, message = "bqk,bkd->bqd"}> : () -> ()
    %cst_15 = arith.constant dense<0.000000e+00> : vector<4x8x8xf32>
    %47 = tpu.matmul %46, %35, %cst_15 {dimension_numbers = #tpu.dot_dimension_numbers<[2], [1], [1], [2], [0, 0, 0, 1, 1, 2], [0], [0]>} : vector<4x8x8xf32>, vector<4x8x8xf32>, vector<4x8x8xf32> -> vector<4x8x8xf32>
    "tpu.trace_stop"() : () -> ()
    %48 = vector.shape_cast %47 : vector<4x8x8xf32> to vector<32x8xf32>
    %49 = tpu.concatenate %29, %48 in 1 : vector<32x8xf32>, vector<32x8xf32> -> vector<32x16xf32>
    %c24 = arith.constant 24 : index
    %c0_16 = arith.constant 0 : index
    %50 = vector.load %arg2[%c24, %c0_16] : memref<120x64xf32, #tpu.memory_space<vmem>>, vector<16x16xf32>
    %cst_17 = arith.constant dense<0.000000e+00> : vector<32x16xf32>
    %51 = tpu.matmul %49, %50, %cst_17 {dimension_numbers = #tpu.dot_dimension_numbers<[1], [0], [0], [1], [0, 0, 1, 1], [], []>} : vector<32x16xf32>, vector<16x16xf32>, vector<32x16xf32> -> vector<32x16xf32>
    %c2 = arith.constant 2 : index
    %c0_18 = arith.constant 0 : index
    %52 = vector.load %arg3[%c2, %c0_18] : memref<16x64xf32, #tpu.memory_space<vmem>>, vector<1x16xf32>
    %53 = vector.broadcast %52 : vector<1x16xf32> to vector<32x16xf32>
    %54 = arith.addf %51, %53 : vector<32x16xf32>
    %55 = arith.addf %5, %54 : vector<32x16xf32>
    %cst_19 = arith.constant dense<0.000000e+00> : vector<32xf32>
    %56 = vector.multi_reduction <add>, %55, %cst_19 [1] : vector<32x16xf32> to vector<32xf32>
    %57 = vector.shape_cast %56 : vector<32xf32> to vector<32x1xf32>
    %cst_20 = arith.constant 1.600000e+01 : f32
    %58 = vector.broadcast %cst_20 : f32 to vector<32x1xf32>
    %59 = arith.divf %57, %58 : vector<32x1xf32>
    %60 = vector.broadcast %59 : vector<32x1xf32> to vector<32x16xf32>
    %61 = arith.subf %55, %60 : vector<32x16xf32>
    %62 = arith.mulf %61, %61 : vector<32x16xf32>
    %cst_21 = arith.constant dense<0.000000e+00> : vector<32xf32>
    %63 = vector.multi_reduction <add>, %62, %cst_21 [1] : vector<32x16xf32> to vector<32xf32>
    %64 = vector.shape_cast %63 : vector<32xf32> to vector<32x1xf32>
    %cst_22 = arith.constant 1.600000e+01 : f32
    %65 = vector.broadcast %cst_22 : f32 to vector<32x1xf32>
    %66 = arith.divf %64, %65 : vector<32x1xf32>
    %67 = vector.broadcast %59 : vector<32x1xf32> to vector<32x16xf32>
    %68 = arith.subf %55, %67 : vector<32x16xf32>
    %cst_23 = arith.constant 9.99999974E-6 : f32
    %69 = vector.broadcast %cst_23 : f32 to vector<32x1xf32>
    %70 = arith.addf %66, %69 : vector<32x1xf32>
    %71 = math.rsqrt %70 : vector<32x1xf32>
    %72 = vector.broadcast %71 : vector<32x1xf32> to vector<32x16xf32>
    %73 = arith.mulf %68, %72 : vector<32x16xf32>
    %c3 = arith.constant 3 : index
    %c0_24 = arith.constant 0 : index
    %74 = vector.load %arg3[%c3, %c0_24] : memref<16x64xf32, #tpu.memory_space<vmem>>, vector<1x16xf32>
    %75 = vector.broadcast %74 : vector<1x16xf32> to vector<32x16xf32>
    %76 = arith.mulf %73, %75 : vector<32x16xf32>
    %c4 = arith.constant 4 : index
    %c0_25 = arith.constant 0 : index
    %77 = vector.load %arg3[%c4, %c0_25] : memref<16x64xf32, #tpu.memory_space<vmem>>, vector<1x16xf32>
    %78 = vector.broadcast %77 : vector<1x16xf32> to vector<32x16xf32>
    %79 = arith.addf %76, %78 : vector<32x16xf32>
    %c40 = arith.constant 40 : index
    %c0_26 = arith.constant 0 : index
    %80 = vector.load %arg2[%c40, %c0_26] : memref<120x64xf32, #tpu.memory_space<vmem>>, vector<16x64xf32>
    %cst_27 = arith.constant dense<0.000000e+00> : vector<32x64xf32>
    %81 = tpu.matmul %79, %80, %cst_27 {dimension_numbers = #tpu.dot_dimension_numbers<[1], [0], [0], [1], [0, 0, 1, 1], [], []>} : vector<32x16xf32>, vector<16x64xf32>, vector<32x64xf32> -> vector<32x64xf32>
    %c5 = arith.constant 5 : index
    %c0_28 = arith.constant 0 : index
    %82 = vector.load %arg3[%c5, %c0_28] : memref<16x64xf32, #tpu.memory_space<vmem>>, vector<1x64xf32>
    %83 = vector.broadcast %82 : vector<1x64xf32> to vector<32x64xf32>
    %84 = arith.addf %81, %83 : vector<32x64xf32>
    %cst_29 = arith.constant 0.000000e+00 : f32
    %85 = vector.broadcast %cst_29 : f32 to vector<32x64xf32>
    %86 = arith.maximumf %84, %85 : vector<32x64xf32>
    %c56 = arith.constant 56 : index
    %c0_30 = arith.constant 0 : index
    %87 = vector.load %arg2[%c56, %c0_30] : memref<120x64xf32, #tpu.memory_space<vmem>>, vector<64x16xf32>
    %cst_31 = arith.constant dense<0.000000e+00> : vector<32x16xf32>
    %88 = tpu.matmul %86, %87, %cst_31 {dimension_numbers = #tpu.dot_dimension_numbers<[1], [0], [0], [1], [0, 0, 1, 1], [], []>} : vector<32x64xf32>, vector<64x16xf32>, vector<32x16xf32> -> vector<32x16xf32>
    %c6 = arith.constant 6 : index
    %c0_32 = arith.constant 0 : index
    %89 = vector.load %arg3[%c6, %c0_32] : memref<16x64xf32, #tpu.memory_space<vmem>>, vector<1x16xf32>
    %90 = vector.broadcast %89 : vector<1x16xf32> to vector<32x16xf32>
    %91 = arith.addf %88, %90 : vector<32x16xf32>
    %92 = arith.addf %79, %91 : vector<32x16xf32>
    %cst_33 = arith.constant dense<0.000000e+00> : vector<32xf32>
    %93 = vector.multi_reduction <add>, %92, %cst_33 [1] : vector<32x16xf32> to vector<32xf32>
    %94 = vector.shape_cast %93 : vector<32xf32> to vector<32x1xf32>
    %cst_34 = arith.constant 1.600000e+01 : f32
    %95 = vector.broadcast %cst_34 : f32 to vector<32x1xf32>
    %96 = arith.divf %94, %95 : vector<32x1xf32>
    %97 = vector.broadcast %96 : vector<32x1xf32> to vector<32x16xf32>
    %98 = arith.subf %92, %97 : vector<32x16xf32>
    %99 = arith.mulf %98, %98 : vector<32x16xf32>
    %cst_35 = arith.constant dense<0.000000e+00> : vector<32xf32>
    %100 = vector.multi_reduction <add>, %99, %cst_35 [1] : vector<32x16xf32> to vector<32xf32>
    %101 = vector.shape_cast %100 : vector<32xf32> to vector<32x1xf32>
    %cst_36 = arith.constant 1.600000e+01 : f32
    %102 = vector.broadcast %cst_36 : f32 to vector<32x1xf32>
    %103 = arith.divf %101, %102 : vector<32x1xf32>
    %104 = vector.broadcast %96 : vector<32x1xf32> to vector<32x16xf32>
    %105 = arith.subf %92, %104 : vector<32x16xf32>
    %cst_37 = arith.constant 9.99999974E-6 : f32
    %106 = vector.broadcast %cst_37 : f32 to vector<32x1xf32>
    %107 = arith.addf %103, %106 : vector<32x1xf32>
    %108 = math.rsqrt %107 : vector<32x1xf32>
    %109 = vector.broadcast %108 : vector<32x1xf32> to vector<32x16xf32>
    %110 = arith.mulf %105, %109 : vector<32x16xf32>
    %c7 = arith.constant 7 : index
    %c0_38 = arith.constant 0 : index
    %111 = vector.load %arg3[%c7, %c0_38] : memref<16x64xf32, #tpu.memory_space<vmem>>, vector<1x16xf32>
    %112 = vector.broadcast %111 : vector<1x16xf32> to vector<32x16xf32>
    %113 = arith.mulf %110, %112 : vector<32x16xf32>
    %c8_39 = arith.constant 8 : index
    %c0_40 = arith.constant 0 : index
    %114 = vector.load %arg3[%c8_39, %c0_40] : memref<16x64xf32, #tpu.memory_space<vmem>>, vector<1x16xf32>
    %115 = vector.broadcast %114 : vector<1x16xf32> to vector<32x16xf32>
    %116 = arith.addf %113, %115 : vector<32x16xf32>
    %c10 = arith.constant 10 : index
    %c0_41 = arith.constant 0 : index
    %117 = vector.load %arg3[%c10, %c0_41] : memref<16x64xf32, #tpu.memory_space<vmem>>, vector<1x16xf32>
    "tpu.trace_start"() <{level = 10 : i32, message = "od,nd->on"}> : () -> ()
    %cst_42 = arith.constant dense<0.000000e+00> : vector<1x32xf32>
    %118 = tpu.matmul %117, %116, %cst_42 {dimension_numbers = #tpu.dot_dimension_numbers<[1], [1], [0], [0], [0, 0, 1, 0], [], []>} : vector<1x16xf32>, vector<32x16xf32>, vector<1x32xf32> -> vector<1x32xf32>
    "tpu.trace_stop"() : () -> ()
    %c9 = arith.constant 9 : index
    %c0_43 = arith.constant 0 : index
    %119 = vector.load %arg3[%c9, %c0_43] : memref<16x64xf32, #tpu.memory_space<vmem>>, vector<1x1xf32>
    %120 = vector.broadcast %119 : vector<1x1xf32> to vector<1x32xf32>
    %121 = arith.addf %118, %120 : vector<1x32xf32>
    %c0_44 = arith.constant 0 : index
    %c0_45 = arith.constant 0 : index
    %c0_46 = arith.constant 0 : index
    %122 = vector.load %arg4[%c0_44, %c0_45, %c0_46] : memref<1x1x32xf32, #tpu.memory_space<vmem>>, vector<1x1x32xf32>
    %123 = vector.shape_cast %122 : vector<1x1x32xf32> to vector<1x32xf32>
    %124 = vector.shape_cast %121 : vector<1x32xf32> to vector<1x1x32xf32>
    tpu.vector_store %arg4[%c0_44, %c0_45, %c0_46], %124 {strides = array<i32>} : memref<1x1x32xf32, #tpu.memory_space<vmem>>, vector<1x1x32xf32>,
    return
  }
  func.func @transform_0(%arg0: i32) -> (i32, i32) {
    %c0_i32 = arith.constant 0 : i32
    %c0_i32_0 = arith.constant 0 : i32
    return %arg0, %c0_i32 : i32, i32
  }
  func.func @transform_1(%arg0: i32) -> (i32, i32) {
    %c0_i32 = arith.constant 0 : i32
    %c0_i32_0 = arith.constant 0 : i32
    %c0_i32_1 = arith.constant 0 : i32
    return %c0_i32, %c0_i32_0 : i32, i32
  }
  func.func @transform_2(%arg0: i32) -> (i32, i32) {
    %c0_i32 = arith.constant 0 : i32
    %c0_i32_0 = arith.constant 0 : i32
    %c0_i32_1 = arith.constant 0 : i32
    return %c0_i32, %c0_i32_0 : i32, i32
  }
  func.func @transform_3(%arg0: i32) -> (i32, i32, i32) {
    %c0_i32 = arith.constant 0 : i32
    %c0_i32_0 = arith.constant 0 : i32
    %c0_i32_1 = arith.constant 0 : i32
    return %arg0, %c0_i32, %c0_i32_0 : i32, i32, i32
  }
}

</mosaic_0001>

<bundles_post_ra>
// kernel: _encode_chunk.1
= control target key start
LH: loop header
LB: loop body
LE: loop exit
PB: predicated region body
PF: predicated region fallthrough
CT: control target
= control target key end

     0   :  { %s2731_s12 = smov 0   ;;  %s3042_s0 = inlined_call_operand.vmem [shape: f32[64,5], index: 0, kind: input, shape index: {}]   ;;  %s3043_s1 = inlined_call_operand.vmem [shape: f32[120,64], index: 1, kind: input, shape index: {}]   ;;  %s3044_s2 = inlined_call_operand.vmem [shape: f32[16,64], index: 2, kind: input, shape index: {}]   ;;  %s3045_s3 = inlined_call_operand.vmem [shape: f32[2,1,32], index: 3, kind: output, shape index: {}]  }
   0x1 LB: > { %s2737_s13 = sadd.s32 4294967295, %s2700_s12   ;;  %p2340_p0 = scmp.ge.s32.totalorder %s2700_s12, 1  ;;  %s2700_s12 = sphi %s2731_s12, %s13_s12  }
   0x2   : > { %p138_p1 = scmp.lt.s32.totalorder %s2700_s12, 3 }
   0x4   : > { %p139_p2 = pnand %p2340_p0, %p138_p1 }
   0x5   : > { %s2341_s16 = sshll.u32 (!%p139_p2), %s2737_s13, 2  ;;  %s2704_s29 = smov (!%p139_p2), 112  }
   0x6   : > { %142 = sbr.rel (%p139_p2) target bundleno = 3338 (0xd0a), region = 32  ;;  %p161_p3 = scmp.lt.s32.totalorder (!%p139_p2), %s2341_s16, 7 }
   0x7   : > { %s2705_s30 = smov (!%p139_p2), 96   ;;  %s2706_s4 = smov (!%p139_p2), 104  }
   0x8   : > { %s2707_s5 = smov (!%p139_p2), 120   ;;  %s2708_s6 = smov (!%p139_p2), 88  }
   0x9   : > { %s2709_s11 = smov (!%p139_p2), 8   ;;  %p166_p4 = scmp.lt.s32.totalorder (!%p139_p2), %s2737_s13, 1 }
   0xb   : > { %v173_v0 = vld [vmem:[%s3043_s1] sm:$0x1f]  ;;  %vm192_vm0 = vcmask 1044480   ;;  %s3047_s16 = smov (!%p161_p3, %s2341_s16), 7  ;;  %vm179_vm1 = vcmask 39936   ;;  %v282_v5 = vld [vmem:[%s3043_s1 + $0x10] sm:$0xff] }
   0xc   : > { %2476 = vmatprep.subr.msk.mxu0 %vm192_vm0, %v173_v0  ;;  %s2342_s17 = sshll.u32 %s3047_s16, 3  ;;  %2484 = vmatprep.subr.mxu1 %v282_v5  ;;  %v281_v6 = vld [vmem:[%s3043_s1 + $0x8] sm:$0xff]  ;;  %v2343_v8 = vld [vmem:[%s3044_s2] ss:$0 sm:$0xff]  ;;  %vm288_vm2 = vcmask 130048   ;;  %v2702_v16 = vmov 0.0  }
   0xd   : > { %2477 = vmatpush3.msk.msra.mxu0 %vm192_vm0, %v173_v0  ;;  %s164_s20 = scalar_lea.vmem %s3042_s0, %s2342_s17  ;;  %2485 = vmatpush3.msra.mxu1 %v282_v5  ;;  %vm2703_vm3 = vmmov 0   ;;  %v2349_v18 = vld [vmem:[%s3044_s2 + $0x1] ss:$0 sm:$0xff]  ;;  %vm389_vm4 = vcmask 64512   ;;  %vm2023_vm5 = vcmask 523264   ;;  %s3049_s13 = smov (!%p166_p4, %s2737_s13), 1 }
   0xe   : > { %v169_v1 = vld [vmem:[%s164_s20] sm:$0xff]  ;;  %v170_v2 = vld [vmem:[%s164_s20 + $0x8] sm:$0xff]  ;;  %v171_v3 = vld [vmem:[%s164_s20 + $0x10] sm:$0xff]  ;;  %2486 = vmatprep.subr.mxu1 %v281_v6  ;;  %2494 = vmatprep.subr.mxu0 %v2702_v16  ;;  %vm2287_vm6 = vcmask 253952  }
   0xf   : > { %2478 = vmatprep.mubr.msk.f32.mxu0 %vm179_vm1, %v169_v1  ;;  %v172_v4 = vld [vmem:[%s164_s20 + $0x18] sm:$0xff]  ;;  %2487 = vmatpush3.msra.mxu1 %v281_v6 }
  0x10   : > { %2479 = vmatmul.mubr.msk.f32.vlgmr.msra.gmra.mxu0 %vm179_vm1, %v170_v2  ;;  %2499 = vmatprep.subr.mxu1 %v2702_v16 }
  0x11   : > { %2481 = vmatprep.mubr.msk.f32.mxu0 %vm179_vm1, %v171_v3 }
  0x14   : > { %2482 = vmatmul.mubr.msk.f32.gmra.mxu0 %vm179_vm1, %v172_v4 }
  0x15   : > { %2496 = vmatprep.mubr.msk.f32.mxu0 %vm2703_vm3, %v2702_v16 }
  0xd0   : > { %v2480_v7 = vpop.f32.mrf.mxu0 }
  0xd1   : > { %v2759_v11 = vadd.f32 %v2480_v7, %v2343_v8 }
  0xd2   : > { %v262_v9 = vpop.f32.mrf.mxu0 }
  0xd3   : > { %v2757_v10 = vadd.f32 %v2343_v8, %v262_v9 }
  0xd4   : > { %v2483_v12 = vpop.f32.mrf.mxu0 }
  0xd5   : > { %2488 = vmatprep.mubr.msk.f32.mxu1 %vm288_vm2, %v2757_v10  ;;  %v2767_v15 = vadd.f32 %v2483_v12, %v2343_v8 }
  0xd6   : > { %v272_v13 = vpop.f32.mrf.mxu0  ;;  %2489 = vmatmul.mubr.msk.f32.vlgmr.msra.gmra.mxu1 %vm288_vm2, %v2759_v11 }
  0xd7   : > { %v2765_v14 = vadd.f32 %v2343_v8, %v272_v13 }
  0xd9   : > { %2491 = vmatprep.mubr.msk.f32.mxu1 %vm288_vm2, %v2765_v14 }
  0xda   : > { %2492 = vmatmul.mubr.msk.f32.gmra.mxu1 %vm288_vm2, %v2767_v15 }
  0xdb   : > { %2501 = vmatprep.mubr.msk.f32.mxu1 %vm2703_vm3, %v2702_v16 }
 0x196   : > { %v2490_v17 = vpop.f32.mrf.mxu1 }
 0x197   : > { %v2785_v23 = vadd.f32 %v2490_v17, %v2349_v18 }
 0x198   : > { %v367_v19 = vpop.f32.mrf.mxu1 }
 0x199   : > { %v2782_v20 = vadd.f32 %v2349_v18, %v367_v19 }
 0x19a   : > { %v2493_v21 = vpop.f32.mrf.mxu1 }
 0x19b   : > { %387 = vrot.lane.b32.xlu0 %v2782_v20, %s2704_s29  ;;  %v2791_v25 = vadd.f32 %v2493_v21, %v2349_v18 }
 0x19c   : > { %v377_v22 = vpop.f32.mrf.mxu1 }
 0x19d   : > { %v2787_v24 = vadd.f32 %v2349_v18, %v377_v22 }
 0x19f   : > { %542 = vrot.lane.b32.xlu1 %v2787_v24, %s2704_s29  ;;  %465 = vrot.lane.b32.xlu0 %v2785_v23, %s2704_s29 }
 0x1a3   : > { %619 = vrot.lane.b32.xlu1 %v2791_v25, %s2704_s29  ;;  %s168_s29 = scalar_lea.vmem %s3045_s3, %s3049_s13 }
 0x20d   : > { %v388_v26 = vpop.permute.xlu0 %387 }
 0x20e   : > { %2495 = vmatpush3.xpose.msk.msra.mxu0 %vm389_vm4, %v388_v26 }
 0x20f   : > { %2504 = vmatprep.subr.mxu0 %v2702_v16 }
 0x211   : > { %v543_v27 = vpop.permute.xlu1 %542  ;;  %2497 = vmatmul.mubr.msk.f32.vlgmr.msra.gmra.mxu0 %vm389_vm4, %v2782_v20  ;;  %v466_v28 = vpop.permute.xlu0 %465 }
 0x212   : > { %2500 = vmatpush3.xpose.msk.msra.mxu1 %vm389_vm4, %v466_v28  ;;  %2505 = vmatpush3.xpose.msk.msra.mxu0 %vm389_vm4, %v543_v27 }
 0x213   : > { %2506 = vmatprep.mubr.msk.f32.mxu0 %vm2703_vm3, %v2702_v16  ;;  %2509 = vmatprep.subr.mxu1 %v2702_v16 }
 0x214   : > { %2514 = vmatprep.subr.mxu0 %v2702_v16 }
 0x215   : > { %v620_v29 = vpop.permute.xlu1 %619  ;;  %2502 = vmatmul.mubr.msk.f32.vlgmr.msra.gmra.mxu1 %vm389_vm4, %v2785_v23  ;;  %2507 = vmatmul.mubr.msk.f32.vlgmr.msra.gmra.mxu0 %vm389_vm4, %v2787_v24 }
 0x216   : > { %2510 = vmatpush3.xpose.msk.msra.mxu1 %vm389_vm4, %v620_v29  ;;  %2511 = vmatprep.mubr.msk.f32.mxu1 %vm2703_vm3, %v2702_v16 }
 0x217   : > { %2519 = vmatprep.subr.mxu1 %v2702_v16  ;;  %2516 = vmatprep.mubr.msk.f32.mxu0 %vm2703_vm3, %v2702_v16 }
 0x219   : > { %2512 = vmatmul.mubr.msk.f32.vlgmr.msra.gmra.mxu1 %vm389_vm4, %v2791_v25 }
 0x21a   : > { %2521 = vmatprep.mubr.msk.f32.mxu1 %vm2703_vm3, %v2702_v16 }
 0x2d1   : > { %v460_v30 = vpop.f32.mrf.mxu0 }
 0x2d2   : > { %v695_v31 = vsel %vm389_vm4, %v460_v30, -inf }
 0x2d3   : > { %696 = vmax.xlane.f32.xlu0 %v695_v31  ;;  %v2498_v32 = vpop.f32.mrf.mxu0 }
 0x2d5   : > { %v537_v33 = vpop.f32.mrf.mxu1  ;;  %v614_v34 = vpop.f32.mrf.mxu0 }
 0x2d6   : > { %v701_v35 = vsel %vm389_vm4, %v614_v34, -inf  ;;  %v698_v36 = vsel %vm389_vm4, %v537_v33, -inf }
 0x2d7   : > { %702 = vmax.xlane.f32.xlu0 %v701_v35  ;;  %v2508_v37 = vpop.f32.mrf.mxu0  ;;  %699 = vmax.xlane.f32.xlu1 %v698_v36  ;;  %v2503_v38 = vpop.f32.mrf.mxu1 }
 0x2d9   : > { %v691_v39 = vpop.f32.mrf.mxu1 }
 0x2da   : > { %v704_v40 = vsel %vm389_vm4, %v691_v39, -inf }
 0x2db   : > { %705 = vmax.xlane.f32.xlu0 %v704_v40  ;;  %v2513_v41 = vpop.f32.mrf.mxu1 }
 0x2e8   : > { %739 = vrot.lane.b32.xlu1 %v2782_v20, %s2705_s30 }
 0x2ec   : > { %891 = vrot.lane.b32.xlu1 %v2787_v24, %s2705_s30 }
 0x2f0   : > { %967 = vrot.lane.b32.xlu1 %v2791_v25, %s2705_s30 }
 0x2f1   : > { %815 = vrot.lane.b32.xlu0 %v2785_v23, %s2705_s30 }
 0x2f4   : > { %1123 = vrot.lane.b32.xlu1 %v2785_v23, %s2706_s4 }
 0x2f5   : > { %1045 = vrot.lane.b32.xlu0 %v2782_v20, %s2706_s4 }
 0x2f8   : > { %1121 = vrot.lane.b32.xlu1 %v2785_v23, %s2707_s5 }
 0x2f9   : > { %1043 = vrot.lane.b32.xlu0 %v2782_v20, %s2707_s5 }
 0x35c   : > { %v697_v42 = vpop.xlane.xlu0 %696 }
 0x35d   : > { %v707_v43 = vsub.f32 %v460_v30, %v697_v42 }
 0x35f   : > { %v711_v44 = vmul.f32 1.442695, %v707_v43 }
 0x360   : > { %v700_v45 = vpop.xlane.xlu1 %699  ;;  %v703_v46 = vpop.xlane.xlu0 %702 }
 0x361   : > { %2646 = vpow2.f32 %v711_v44  ;;  %v708_v47 = vsub.f32 %v537_v33, %v700_v45  ;;  %v709_v48 = vsub.f32 %v614_v34, %v703_v46 }
 0x363   : > { %v713_v49 = vmul.f32 1.442695, %v708_v47  ;;  %v715_v50 = vmul.f32 1.442695, %v709_v48 }
 0x364   : > { %v740_v51 = vpop.permute.xlu1 %739  ;;  %v706_v52 = vpop.xlane.xlu0 %705 }
 0x365   : > { %2648 = vpow2.f32 %v713_v49  ;;  %v710_v53 = vsub.f32 %v691_v39, %v706_v52  ;;  %2515 = vmatpush3.msra.mxu0 %v740_v51 }
 0x366   : > { %2650 = vpow2.f32 %v715_v50  ;;  %2524 = vmatprep.subr.mxu0 %v2702_v16 }
 0x367   : > { %v717_v54 = vmul.f32 1.442695, %v710_v53 }
 0x368   : > { %v816_v55 = vpop.permute.xlu0 %815  ;;  %v892_v0 = vpop.permute.xlu1 %891 }
 0x369   : > { %2652 = vpow2.f32 %v717_v54  ;;  %2520 = vmatpush3.msra.mxu1 %v816_v55 }
 0x36a   : > { %2529 = vmatprep.subr.mxu1 %v2702_v16 }
 0x36c   : > { %v968_v1 = vpop.permute.xlu1 %967  ;;  %v1046_v3 = vpop.permute.xlu0 %1045 }
 0x36e   : > { %v2647_v56 = vpop.eup %2646 }
 0x36f   : > { %v719_v57 = vsel %vm389_vm4, %v2647_v56, 0.0 }
 0x370   : > { %720 = vadd.xlane.f32.xlu1 %v719_v57  ;;  %v1124_v2 = vpop.permute.xlu1 %1123  ;;  %v1044_v5 = vpop.permute.xlu0 %1043 }
 0x372   : > { %v2649_v58 = vpop.eup %2648 }
 0x373   : > { %v2651_v59 = vpop.eup %2650  ;;  %v722_v60 = vsel %vm389_vm4, %v2649_v58, 0.0 }
 0x374   : > { %723 = vadd.xlane.f32.xlu0 %v722_v60  ;;  %v725_v61 = vsel %vm389_vm4, %v2651_v59, 0.0  ;;  %v1122_v4 = vpop.permute.xlu1 %1121 }
 0x375   : > { %726 = vadd.xlane.f32.xlu1 %v725_v61 }
 0x376   : > { %v2653_v62 = vpop.eup %2652 }
 0x377   : > { %v728_v63 = vsel %vm389_vm4, %v2653_v62, 0.0 }
 0x378   : > { %729 = vadd.xlane.f32.xlu0 %v728_v63 }
 0x386   : > { %1279 = vrot.lane.b32.xlu1 %v2791_v25, %s2706_s4 }
 0x38a   : > { %1277 = vrot.lane.b32.xlu1 %v2791_v25, %s2707_s5 }
 0x38e   : > { %1201 = vrot.lane.b32.xlu0 %v2787_v24, %s2706_s4 }
 0x392   : > { %1199 = vrot.lane.b32.xlu0 %v2787_v24, %s2707_s5 }
 0x3f9   : > { %v721_v6 = vpop.xlane.xlu1 %720 }
 0x3fa   : > { %2654 = vrcp.f32 %v721_v6 }
 0x3fd   : > { %v724_v7 = vpop.xlane.xlu0 %723 }
 0x3fe   : > { %v727_v8 = vpop.xlane.xlu1 %726  ;;  %2656 = vrcp.f32 %v724_v7 }
 0x3ff   : > { %2658 = vrcp.f32 %v727_v8 }
 0x401   : > { %v730_v9 = vpop.xlane.xlu0 %729 }
 0x402   : > { %2660 = vrcp.f32 %v730_v9  ;;  %v1280_v28 = vpop.permute.xlu1 %1279 }
 0x405   : > { %v1202_v26 = vpop.permute.xlu0 %1201 }
 0x406   : > { %v1278_v30 = vpop.permute.xlu1 %1277 }
 0x407   : > { %v2655_v12 = vpop.eup %2654 }
 0x408   : > { %v735_v13 = vmul.f32 %v2655_v12, %v2647_v56 }
 0x409   : > { %v1200_v29 = vpop.permute.xlu0 %1199 }
 0x40a   : > { %2517 = vmatmul.mubr.msk.f32.vlgmr.msra.gmra.mxu0 %vm389_vm4, %v735_v13 }
 0x40b   : > { %v2657_v17 = vpop.eup %2656  ;;  %2525 = vmatpush3.msra.mxu0 %v892_v0  ;;  %2526 = vmatprep.mubr.msk.f32.mxu0 %vm2703_vm3, %v2702_v16 }
 0x40c   : > { %v2659_v18 = vpop.eup %2658  ;;  %2534 = vmatprep.subr.mxu0 %v2702_v16  ;;  %v736_v19 = vmul.f32 %v2657_v17, %v2649_v58 }
 0x40d   : > { %v737_v21 = vmul.f32 %v2659_v18, %v2651_v59 }
 0x40e   : > { %2522 = vmatmul.mubr.msk.f32.vlgmr.msra.gmra.mxu1 %vm389_vm4, %v736_v19 }
 0x40f   : > { %v2661_v22 = vpop.eup %2660  ;;  %2527 = vmatmul.mubr.msk.f32.vlgmr.msra.gmra.mxu0 %vm389_vm4, %v737_v21  ;;  %2530 = vmatpush3.msra.mxu1 %v968_v1 }
 0x410   : > { %2535 = vmatpush3.xpose.msk.msra.mxu0 %vm389_vm4, %v1046_v3  ;;  %2531 = vmatprep.mubr.msk.f32.mxu1 %vm2703_vm3, %v2702_v16  ;;  %v738_v27 = vmul.f32 %v2661_v22, %v2653_v62 }
 0x411   : > { %2536 = vmatprep.mubr.msk.f32.mxu0 %vm2703_vm3, %v2702_v16  ;;  %2539 = vmatprep.subr.mxu1 %v2702_v16 }
 0x412   : > { %2544 = vmatprep.subr.mxu0 %v2702_v16  ;;  %2532 = vmatmul.mubr.msk.f32.vlgmr.msra.gmra.mxu1 %vm389_vm4, %v738_v27 }
 0x413   : > { %2537 = vmatmul.mubr.msk.f32.vlgmr.msra.gmra.mxu0 %vm389_vm4, %v1044_v5  ;;  %2540 = vmatpush3.xpose.msk.msra.mxu1 %vm389_vm4, %v1124_v2 }
 0x414   : > { %2545 = vmatpush3.xpose.msk.msra.mxu0 %vm389_vm4, %v1202_v26  ;;  %2541 = vmatprep.mubr.msk.f32.mxu1 %vm2703_vm3, %v2702_v16 }
 0x415   : > { %2546 = vmatprep.mubr.msk.f32.mxu0 %vm2703_vm3, %v2702_v16  ;;  %2549 = vmatprep.subr.mxu1 %v2702_v16 }
 0x416   : > { %2542 = vmatmul.mubr.msk.f32.vlgmr.msra.gmra.mxu1 %vm389_vm4, %v1122_v4  ;;  %2554 = vmatprep.subr.mxu0 %v2702_v16 }
 0x417   : > { %2547 = vmatmul.mubr.msk.f32.vlgmr.msra.gmra.mxu0 %vm389_vm4, %v1200_v29  ;;  %2550 = vmatpush3.xpose.msk.msra.mxu1 %vm389_vm4, %v1280_v28  ;;  %v1724_v28 = vld [vmem:[%s3043_s1 + $0x20] sm:$0xff]  ;;  %v1723_v29 = vld [vmem:[%s3043_s1 + $0x18] sm:$0xff] }
 0x418   : > { %2551 = vmatprep.mubr.msk.f32.mxu1 %vm2703_vm3, %v2702_v16  ;;  %2559 = vmatprep.subr.mxu1 %v2702_v16 }
 0x419   : > { %2556 = vmatprep.mubr.msk.f32.mxu0 %vm2703_vm3, %v2702_v16 }
 0x41a   : > { %2552 = vmatmul.mubr.msk.f32.vlgmr.msra.gmra.mxu1 %vm389_vm4, %v1278_v30 }
 0x41b   : > { %2561 = vmatprep.mubr.msk.f32.mxu1 %vm2703_vm3, %v2702_v16 }
 0x4ca   : > { %v2882_v31 = vpop.f32.mrf.mxu0 }
 0x4cc   : > { %v2518_v32 = vpop.f32.mrf.mxu0 }
 0x4ce   : > { %v2884_v33 = vpop.f32.mrf.mxu1 }
 0x4cf   : > { %v2886_v34 = vpop.f32.mrf.mxu0 }
 0x4d0   : > { %v2523_v35 = vpop.f32.mrf.mxu1 }
 0x4d1   : > { %v2528_v36 = vpop.f32.mrf.mxu0 }
 0x4d2   : > { %v2888_v37 = vpop.f32.mrf.mxu1 }
 0x4d3   : > { %v1117_v38 = vpop.f32.mrf.mxu0 }
 0x4d4   : > { %v1355_v39 = vsel %vm389_vm4, %v1117_v38, -inf  ;;  %v2533_v40 = vpop.f32.mrf.mxu1 }
 0x4d5   : > { %1356 = vmax.xlane.f32.xlu0 %v1355_v39  ;;  %v2538_v41 = vpop.f32.mrf.mxu0 }
 0x4d6   : > { %v1195_v42 = vpop.f32.mrf.mxu1 }
 0x4d7   : > { %v1273_v43 = vpop.f32.mrf.mxu0  ;;  %v1358_v44 = vsel %vm389_vm4, %v1195_v42, -inf }
 0x4d8   : > { %1359 = vmax.xlane.f32.xlu1 %v1358_v44  ;;  %v2543_v45 = vpop.f32.mrf.mxu1  ;;  %v1361_v46 = vsel %vm389_vm4, %v1273_v43, -inf }
 0x4d9   : > { %1362 = vmax.xlane.f32.xlu0 %v1361_v46  ;;  %v2548_v47 = vpop.f32.mrf.mxu0 }
 0x4da   : > { %v1351_v48 = vpop.f32.mrf.mxu1 }
 0x4db   : > { %v1364_v49 = vsel %vm389_vm4, %v1351_v48, -inf }
 0x4dc   : > { %v2553_v50 = vpop.f32.mrf.mxu1 }
 0x4dd   : > { %1365 = vmax.xlane.f32.xlu0 %v1364_v49 }
 0x4e9   : > { %1399 = vrot.lane.b32.xlu1 %v2782_v20, %s2708_s6 }
 0x55e   : > { %v1357_v51 = vpop.xlane.xlu0 %1356 }
 0x55f   : > { %v1367_v52 = vsub.f32 %v1117_v38, %v1357_v51 }
 0x561   : > { %v1371_v53 = vmul.f32 1.442695, %v1367_v52  ;;  %v1360_v54 = vpop.xlane.xlu1 %1359 }
 0x562   : > { %v1368_v55 = vsub.f32 %v1195_v42, %v1360_v54  ;;  %v1363_v56 = vpop.xlane.xlu0 %1362 }
 0x563   : > { %2662 = vpow2.f32 %v1371_v53  ;;  %v1369_v3 = vsub.f32 %v1273_v43, %v1363_v56 }
 0x564   : > { %v1373_v57 = vmul.f32 1.442695, %v1368_v55 }
 0x565   : > { %v1400_v58 = vpop.permute.xlu1 %1399  ;;  %v1375_v4 = vmul.f32 1.442695, %v1369_v3 }
 0x566   : > { %2664 = vpow2.f32 %v1373_v57  ;;  %v1366_v59 = vpop.xlane.xlu0 %1365  ;;  %2555 = vmatpush3.msra.mxu0 %v1400_v58 }
 0x567   : > { %v1370_v60 = vsub.f32 %v1351_v48, %v1366_v59  ;;  %2564 = vmatprep.subr.mxu0 %v2702_v16 }
 0x569   : > { %v1377_v61 = vmul.f32 1.442695, %v1370_v60 }
 0x56b   : > { %2666 = vpow2.f32 %v1377_v61 }
 0x56c   : > { %2668 = vpow2.f32 %v1375_v4 }
 0x570   : > { %v2663_v62 = vpop.eup %2662 }
 0x571   : > { %v1379_v20 = vsel %vm389_vm4, %v2663_v62, 0.0 }
 0x572   : > { %1380 = vadd.xlane.f32.xlu1 %v1379_v20 }
 0x573   : > { %v2665_v63 = vpop.eup %2664 }
 0x574   : > { %v1382_v0 = vsel %vm389_vm4, %v2665_v63, 0.0 }
 0x575   : > { %1383 = vadd.xlane.f32.xlu0 %v1382_v0 }
 0x578   : > { %v2667_v1 = vpop.eup %2666 }
 0x579   : > { %v1388_v2 = vsel %vm389_vm4, %v2667_v1, 0.0  ;;  %v2669_v5 = vpop.eup %2668 }
 0x57a   : > { %1389 = vadd.xlane.f32.xlu0 %v1388_v2  ;;  %v1385_v6 = vsel %vm389_vm4, %v2669_v5, 0.0 }
 0x583   : > { %1551 = vrot.lane.b32.xlu1 %v2787_v24, %s2708_s6 }
 0x590   : > { %1475 = vrot.lane.b32.xlu0 %v2785_v23, %s2708_s6 }
 0x5a7   : > { %1386 = vadd.xlane.f32.xlu1 %v1385_v6 }
 0x5b8   : > { %1627 = vrot.lane.b32.xlu1 %v2791_v25, %s2708_s6 }
 0x5fb   : > { %v1381_v7 = vpop.xlane.xlu1 %1380 }
 0x5fc   : > { %2670 = vrcp.f32 %v1381_v7 }
 0x5fe   : > { %v1384_v8 = vpop.xlane.xlu0 %1383 }
 0x5ff   : > { %2672 = vrcp.f32 %v1384_v8  ;;  %v1552_v17 = vpop.permute.xlu1 %1551 }
 0x603   : > { %v1390_v9 = vpop.xlane.xlu0 %1389 }
 0x604   : > { %2674 = vrcp.f32 %v1390_v9 }
 0x607   : > { %v1476_v12 = vpop.permute.xlu0 %1475 }
 0x608   : > { %2560 = vmatpush3.msra.mxu1 %v1476_v12 }
 0x609   : > { %v2671_v24 = vpop.eup %2670  ;;  %2569 = vmatprep.subr.mxu1 %v2702_v16 }
 0x60a   : > { %v1395_v23 = vmul.f32 %v2671_v24, %v2663_v62 }
 0x60c   : > { %v2673_v13 = vpop.eup %2672  ;;  %2557 = vmatmul.mubr.msk.f32.vlgmr.msra.gmra.mxu0 %vm389_vm4, %v1395_v23 }
 0x60d   : > { %2565 = vmatpush3.msra.mxu0 %v1552_v17  ;;  %v1396_v18 = vmul.f32 %v2673_v13, %v2665_v63  ;;  %2566 = vmatprep.mubr.msk.f32.mxu0 %vm2703_vm3, %v2702_v16 }
 0x60e   : > { %2574 = vmatprep.subr.mxu0 %v1724_v28 }
 0x60f   : > { %2562 = vmatmul.mubr.msk.f32.vlgmr.msra.gmra.mxu1 %vm389_vm4, %v1396_v18 }
 0x610   : > { %2571 = vmatprep.mubr.msk.f32.mxu1 %vm2703_vm3, %v2702_v16 }
 0x611   : > { %v2675_v19 = vpop.eup %2674 }
 0x612   : > { %v1398_v22 = vmul.f32 %v2675_v19, %v2667_v1  ;;  %v2016_v19 = vld [vmem:[%s3043_s1 + $0x68] sm:$0xff] }
 0x630   : > { %v1387_v25 = vpop.xlane.xlu1 %1386 }
 0x631   : > { %2676 = vrcp.f32 %v1387_v25  ;;  %v2017_v25 = vld [vmem:[%s3043_s1 + $0x70] sm:$0xff] }
 0x634   : > { %v1628_v21 = vpop.permute.xlu1 %1627 }
 0x635   : > { %2570 = vmatpush3.msra.mxu1 %v1628_v21  ;;  %v2015_v21 = vld [vmem:[%s3043_s1 + $0x60] sm:$0xff] }
 0x636   : > { %2572 = vmatmul.mubr.msk.f32.vlgmr.msra.gmra.mxu1 %vm389_vm4, %v1398_v22  ;;  %v2014_v22 = vld [vmem:[%s3043_s1 + $0x58] sm:$0xff] }
 0x63e   : > { %v2677_v26 = vpop.eup %2676 }
 0x63f   : > { %v1397_v27 = vmul.f32 %v2677_v26, %v2669_v5  ;;  %v1902_v5 = vld [vmem:[%s3043_s1 + $0x28] sm:$0xff] }
 0x641   : > { %2567 = vmatmul.mubr.msk.f32.vlgmr.msra.gmra.mxu0 %vm389_vm4, %v1397_v27 }
 0x642   : > { %2575 = vmatpush3.msra.mxu0 %v1724_v28 }
 0x643   : > { %2576 = vmatprep.subr.mxu0 %v1723_v29 }
 0x644   : > { %2577 = vmatpush3.msra.mxu0 %v1723_v29 }
 0x645   : > { %2594 = vmatprep.subr.mxu0 %v2017_v25 }
 0x6cc   : > { %v1471_v30 = vpop.f32.mrf.mxu0 }
 0x6cd   : > { %1707 = vrot.lane.b32.xlu0 %v1471_v30, %s2709_s11 }
 0x6ce   : > { %v2558_v32 = vpop.f32.mrf.mxu0 }
 0x6cf   : > { %v1547_v35 = vpop.f32.mrf.mxu1 }
 0x6d0   : > { %1709 = vrot.lane.b32.xlu1 %v1547_v35, %s2709_s11 }
 0x6d1   : > { %v2563_v36 = vpop.f32.mrf.mxu1 }
 0x6f6   : > { %v1699_v38 = vpop.f32.mrf.mxu1 }
 0x6f7   : > { %1713 = vrot.lane.b32.xlu1 %v1699_v38, %s2709_s11  ;;  %v2383_v38 = vld [vmem:[%s3044_s2 + $0x3] ss:$0 sm:$0xff] }
 0x6f8   : > { %v2573_v39 = vpop.f32.mrf.mxu1 }
 0x701   : > { %v1623_v40 = vpop.f32.mrf.mxu0 }
 0x702   : > { %1711 = vrot.lane.b32.xlu0 %v1623_v40, %s2709_s11 }
 0x703   : > { %v2568_v41 = vpop.f32.mrf.mxu0 }
 0x73f   : > { %v1708_v42 = vpop.permute.xlu0 %1707 }
 0x740   : > { %v1719_v43 = vsel %vm389_vm4, %v2882_v31, %v1708_v42  ;;  %v2378_v31 = vld [vmem:[%s3044_s2 + $0x2] ss:$0 sm:$0xff] }
 0x741   : > { %2578 = vmatprep.mubr.msk.f32.mxu0 %vm288_vm2, %v1719_v43  ;;  %v2384_v43 = vld [vmem:[%s3044_s2 + $0x4] ss:$0 sm:$0xff] }
 0x742   : > { %v1710_v44 = vpop.permute.xlu1 %1709 }
 0x743   : > { %v1720_v45 = vsel %vm389_vm4, %v2884_v33, %v1710_v44 }
 0x744   : > { %2579 = vmatmul.mubr.msk.f32.vlgmr.msra.gmra.mxu0 %vm288_vm2, %v1720_v45 }
 0x745   : > { %2595 = vmatpush3.msra.mxu0 %v2017_v25 }
 0x746   : > { %2596 = vmatprep.subr.mxu0 %v2016_v19 }
 0x747   : > { %2597 = vmatpush3.msra.mxu0 %v2016_v19 }
 0x748   : > { %2598 = vmatprep.subr.mxu0 %v2015_v21 }
 0x749   : > { %2599 = vmatpush3.msra.mxu0 %v2015_v21 }
 0x74a   : > { %2600 = vmatprep.subr.mxu0 %v2014_v22 }
 0x74b   : > { %2601 = vmatpush3.msra.mxu0 %v2014_v22 }
 0x769   : > { %v1714_v46 = vpop.permute.xlu1 %1713 }
 0x76a   : > { %v1722_v49 = vsel %vm389_vm4, %v2888_v37, %v1714_v46 }
 0x774   : > { %v1712_v47 = vpop.permute.xlu0 %1711 }
 0x775   : > { %v1721_v48 = vsel %vm389_vm4, %v2886_v34, %v1712_v47 }
 0x776   : > { %2581 = vmatprep.mubr.msk.f32.mxu0 %vm288_vm2, %v1721_v48 }
 0x777   : > { %2582 = vmatmul.mubr.msk.f32.gmra.mxu0 %vm288_vm2, %v1722_v49 }
 0x804   : > { %v2580_v50 = vpop.f32.mrf.mxu0 }
 0x805   : > { %v1814_v33 = vadd.f32 %v2580_v50, %v2378_v31 }
 0x806   : > { %v1808_v51 = vpop.f32.mrf.mxu0 }
 0x807   : > { %v1809_v52 = vadd.f32 %v2378_v31, %v1808_v51  ;;  %v1828_v53 = vadd.f32 %v1814_v33, %v2759_v11 }
 0x809   : > { %v1834_v54 = vsel %vm288_vm2, %v1828_v53, 0.0  ;;  %v1827_v34 = vadd.f32 %v1809_v52, %v2757_v10 }
 0x80a   : > { %1835 = vadd.xlane.f32.xlu1 %v1834_v54 }
 0x80b   : > { %v1831_v37 = vsel %vm288_vm2, %v1827_v34, 0.0 }
 0x80c   : > { %1832 = vadd.xlane.f32.xlu0 %v1831_v37 }
 0x837   : > { %v2583_v55 = vpop.f32.mrf.mxu0 }
 0x838   : > { %v1824_v57 = vadd.f32 %v2583_v55, %v2378_v31 }
 0x839   : > { %v1818_v56 = vpop.f32.mrf.mxu0 }
 0x83a   : > { %v1819_v58 = vadd.f32 %v2378_v31, %v1818_v56  ;;  %v1830_v61 = vadd.f32 %v1824_v57, %v2767_v15  ;;  %v1903_v15 = vld [vmem:[%s3043_s1 + $0x30] sm:$0xff]  ;;  %v2012_v57 = vld [vmem:[%s3043_s1 + $0x48] sm:$0xff] }
 0x83b   : > { %2584 = vmatprep.subr.mxu1 %v1903_v15  ;;  %v2013_v56 = vld [vmem:[%s3043_s1 + $0x50] sm:$0xff] }
 0x83c   : > { %v1829_v59 = vadd.f32 %v1819_v58, %v2765_v14  ;;  %v1840_v11 = vsel %vm288_vm2, %v1830_v61, 0.0  ;;  %2585 = vmatpush3.msra.mxu1 %v1903_v15  ;;  %2602 = vmatprep.subr.mxu0 %v2013_v56  ;;  %v2011_v58 = vld [vmem:[%s3043_s1 + $0x40] sm:$0xff] }
 0x83d   : > { %2586 = vmatprep.subr.mxu1 %v1902_v5  ;;  %2603 = vmatpush3.msra.mxu0 %v2013_v56 }
 0x83e   : > { %v1837_v60 = vsel %vm288_vm2, %v1829_v59, 0.0  ;;  %2587 = vmatpush3.msra.mxu1 %v1902_v5  ;;  %2604 = vmatprep.subr.mxu0 %v2012_v57  ;;  %v2390_v5 = vld [vmem:[%s3044_s2 + $0x6] ss:$0 sm:$0xff] }
 0x83f   : > { %1838 = vadd.xlane.f32.xlu0 %v1837_v60  ;;  %2616 = vmatprep.subr.mxu1 %v2702_v16  ;;  %v2385_v60 = vld [vmem:[%s3044_s2 + $0x5] ss:$0 sm:$0xff] }
 0x840   : > { %2605 = vmatpush3.msra.mxu0 %v2012_v57 }
 0x841   : > { %2606 = vmatprep.subr.mxu0 %v2011_v58 }
 0x842   : > { %2607 = vmatpush3.msra.mxu0 %v2011_v58 }
 0x843   : > { %1841 = vadd.xlane.f32.xlu0 %v1840_v11 }
 0x893   : > { %v1836_v62 = vpop.xlane.xlu1 %1835 }
 0x894   : > { %v1845_v10 = vmul.f32 0.0625, %v1836_v62 }
 0x895   : > { %v1833_v20 = vpop.xlane.xlu0 %1832 }
 0x896   : > { %v1849_v63 = vsub.f32 %v1828_v53, %v1845_v10  ;;  %v1844_v0 = vmul.f32 0.0625, %v1833_v20 }
 0x898   : > { %v1848_v1 = vsub.f32 %v1827_v34, %v1844_v0  ;;  %v1853_v2 = vmul.f32 %v1849_v63, %v1849_v63 }
 0x89a   : > { %v1859_v3 = vsel %vm288_vm2, %v1853_v2, 0.0  ;;  %v1852_v4 = vmul.f32 %v1848_v1, %v1848_v1 }
 0x89b   : > { %1860 = vadd.xlane.f32.xlu0 %v1859_v3 }
 0x89c   : > { %v1856_v14 = vsel %vm288_vm2, %v1852_v4, 0.0 }
 0x89d   : > { %1857 = vadd.xlane.f32.xlu1 %v1856_v14 }
 0x8c8   : > { %v1839_v6 = vpop.xlane.xlu0 %1838 }
 0x8c9   : > { %v1846_v7 = vmul.f32 0.0625, %v1839_v6 }
 0x8cb   : > { %v1850_v8 = vsub.f32 %v1829_v59, %v1846_v7  ;;  %v2010_v59 = vld [vmem:[%s3043_s1 + $0x38] sm:$0xff] }
 0x8cc   : > { %v1842_v9 = vpop.xlane.xlu0 %1841  ;;  %2608 = vmatprep.subr.mxu0 %v2010_v59 }
 0x8cd   : > { %v1847_v12 = vmul.f32 0.0625, %v1842_v9  ;;  %v1854_v24 = vmul.f32 %v1850_v8, %v1850_v8  ;;  %2609 = vmatpush3.msra.mxu0 %v2010_v59 }
 0x8cf   : > { %v1851_v23 = vsub.f32 %v1830_v61, %v1847_v12  ;;  %v1862_v13 = vsel %vm288_vm2, %v1854_v24, 0.0 }
 0x8d0   : > { %1863 = vadd.xlane.f32.xlu1 %v1862_v13 }
 0x8d1   : > { %v1855_v17 = vmul.f32 %v1851_v23, %v1851_v23 }
 0x8d3   : > { %v1865_v18 = vsel %vm288_vm2, %v1855_v17, 0.0 }
 0x8d4   : > { %1866 = vadd.xlane.f32.xlu0 %v1865_v18 }
 0x924   : > { %v1861_v26 = vpop.xlane.xlu0 %1860 }
 0x925   : > { %v1869_v27 = vmul.f32 0.0625, %v1861_v26 }
 0x926   : > { %v1858_v28 = vpop.xlane.xlu1 %1857 }
 0x927   : > { %v1873_v29 = vadd.f32 1e-05, %v1869_v27  ;;  %v1868_v30 = vmul.f32 0.0625, %v1858_v28 }
 0x929   : > { %2678 = vrsqrt.f32 %v1873_v29  ;;  %v1872_v32 = vadd.f32 1e-05, %v1868_v30 }
 0x92b   : > { %2680 = vrsqrt.f32 %v1872_v32 }
 0x936   : > { %v2679_v35 = vpop.eup %2678 }
 0x937   : > { %v1881_v36 = vmul.f32 %v2679_v35, %v1849_v63 }
 0x938   : > { %v2681_v39 = vpop.eup %2680 }
 0x939   : > { %v1880_v40 = vmul.f32 %v2681_v39, %v1848_v1  ;;  %v1890_v41 = vmul.f32 %v2383_v38, %v1881_v36 }
 0x93b   : > { %v1889_v42 = vmul.f32 %v2383_v38, %v1880_v40  ;;  %v2976_v45 = vadd.f32 %v2384_v43, %v1890_v41 }
 0x93d   : > { %v2974_v44 = vadd.f32 %v2384_v43, %v1889_v42 }
 0x93f   : > { %2588 = vmatprep.mubr.msk.f32.mxu1 %vm288_vm2, %v2974_v44 }
 0x940   : > { %2589 = vmatmul.mubr.msk.f32.vlgmr.msra.gmra.mxu1 %vm288_vm2, %v2976_v45 }
 0x959   : > { %v1864_v46 = vpop.xlane.xlu1 %1863 }
 0x95a   : > { %v1870_v47 = vmul.f32 0.0625, %v1864_v46 }
 0x95c   : > { %v1874_v48 = vadd.f32 1e-05, %v1870_v47 }
 0x95d   : > { %v1867_v49 = vpop.xlane.xlu0 %1866 }
 0x95e   : > { %2682 = vrsqrt.f32 %v1874_v48  ;;  %v1871_v31 = vmul.f32 0.0625, %v1867_v49 }
 0x960   : > { %v1875_v50 = vadd.f32 1e-05, %v1871_v31 }
 0x962   : > { %2684 = vrsqrt.f32 %v1875_v50  ;;  %v2196_v50 = vld [vmem:[%s3044_s2 + $0x9] sm:$0x1] }
 0x96b   : > { %v2683_v33 = vpop.eup %2682 }
 0x96c   : > { %v1882_v51 = vmul.f32 %v2683_v33, %v1850_v8  ;;  %v2710_v33 = vmov 0  }
 0x96d   : > { %2644 = vset.pattern.permute.xlu1 %v2710_v33  ;;  %2645 = vset.pattern.permute.xlu0 %v2710_v33 }
 0x96e   : > { %v1891_v52 = vmul.f32 %v2383_v38, %v1882_v51 }
 0x96f   : > { %v2685_v53 = vpop.eup %2684 }
 0x970   : > { %v1900_v54 = vadd.f32 %v2384_v43, %v1891_v52  ;;  %v1883_v34 = vmul.f32 %v2685_v53, %v1851_v23 }
 0x972   : > { %2591 = vmatprep.mubr.msk.f32.mxu1 %vm288_vm2, %v1900_v54  ;;  %v1892_v37 = vmul.f32 %v2383_v38, %v1883_v34 }
 0x974   : > { %v1901_v55 = vadd.f32 %v2384_v43, %v1892_v37 }
 0x976   : > { %2592 = vmatmul.mubr.msk.f32.gmra.mxu1 %vm288_vm2, %v1901_v55 }
 0x977   : > { %2624 = vmatprep.mubr.msk.f32.mxu1 %vm2703_vm3, %v2702_v16 }
 0xa00   : > { %v2590_v61 = vpop.f32.mrf.mxu1 }
 0xa01   : > { %v1993_v11 = vadd.f32 %v2590_v61, %v2385_v60 }
 0xa02   : > { %v1987_v62 = vpop.f32.mrf.mxu1 }
 0xa03   : > { %v1988_v10 = vadd.f32 %v2385_v60, %v1987_v62  ;;  %v2007_v63 = vmax.f32 %v1993_v11, 0.0  ;;  %v2395_v11 = vld [vmem:[%s3044_s2 + $0x7] ss:$0 sm:$0xff] }
 0xa05   : > { %v2006_v20 = vmax.f32 %v1988_v10, 0.0 }
 0xa07   : > { %2610 = vmatprep.mubr.msk.f32.mxu0 %vm2023_vm5, %v2006_v20  ;;  %v2396_v20 = vld [vmem:[%s3044_s2 + $0x8] ss:$0 sm:$0xff] }
 0xa08   : > { %2611 = vmatmul.mubr.msk.f32.vlgmr.msra.gmra.mxu0 %vm2023_vm5, %v2007_v63 }
 0xa36   : > { %v2593_v0 = vpop.f32.mrf.mxu1 }
 0xa37   : > { %v2003_v1 = vadd.f32 %v2593_v0, %v2385_v60 }
 0xa38   : > { %v1997_v2 = vpop.f32.mrf.mxu1 }
 0xa39   : > { %v1998_v3 = vadd.f32 %v2385_v60, %v1997_v2  ;;  %v2009_v14 = vmax.f32 %v2003_v1, 0.0 }
 0xa3b   : > { %v2008_v4 = vmax.f32 %v1998_v3, 0.0 }
 0xa3d   : > { %2613 = vmatprep.mubr.msk.f32.mxu0 %vm2023_vm5, %v2008_v4 }
 0xa3e   : > { %2614 = vmatmul.mubr.msk.f32.gmra.mxu0 %vm2023_vm5, %v2009_v14 }
 0xac8   : > { %v2612_v15 = vpop.f32.mrf.mxu0 }
 0xac9   : > { %v2108_v8 = vadd.f32 %v2612_v15, %v2390_v5 }
 0xaca   : > { %v2102_v6 = vpop.f32.mrf.mxu0 }
 0xacb   : > { %v2103_v24 = vadd.f32 %v2390_v5, %v2102_v6  ;;  %v2122_v25 = vadd.f32 %v2108_v8, %v2976_v45 }
 0xacd   : > { %v2121_v21 = vadd.f32 %v2103_v24, %v2974_v44  ;;  %v2128_v22 = vsel %vm288_vm2, %v2122_v25, 0.0 }
 0xacf   : > { %v2125_v26 = vsel %vm288_vm2, %v2121_v21, 0.0 }
 0xafe   : > { %v2615_v7 = vpop.f32.mrf.mxu0 }
 0xaff   : > { %v2118_v9 = vadd.f32 %v2615_v7, %v2390_v5 }
 0xb00   : > { %v2112_v12 = vpop.f32.mrf.mxu0 }
 0xb01   : > { %v2113_v23 = vadd.f32 %v2390_v5, %v2112_v12  ;;  %v2124_v13 = vadd.f32 %v2118_v9, %v1901_v55  ;;  %v2195_v12 = vld [vmem:[%s3044_s2 + $0xa] sm:$0x1] }
 0xb03   : > { %v2134_v17 = vsel %vm288_vm2, %v2124_v13, 0.0  ;;  %v2123_v18 = vadd.f32 %v2113_v23, %v1900_v54 }
 0xb04   : > { %2135 = vadd.xlane.f32.xlu1 %v2134_v17 }
 0xb05   : > { %v2131_v19 = vsel %vm288_vm2, %v2123_v18, 0.0 }
 0xb06   : > { %2132 = vadd.xlane.f32.xlu0 %v2131_v19 }
 0xb08   : > { %2129 = vadd.xlane.f32.xlu1 %v2128_v22 }
 0xb0a   : > { %2126 = vadd.xlane.f32.xlu0 %v2125_v26 }
 0xb8d   : > { %v2136_v27 = vpop.xlane.xlu1 %2135 }
 0xb8e   : > { %v2140_v28 = vmul.f32 0.0625, %v2136_v27 }
 0xb8f   : > { %v2133_v29 = vpop.xlane.xlu0 %2132 }
 0xb90   : > { %v2144_v30 = vsub.f32 %v2124_v13, %v2140_v28  ;;  %v2139_v32 = vmul.f32 0.0625, %v2133_v29 }
 0xb91   : > { %v2130_v35 = vpop.xlane.xlu1 %2129 }
 0xb92   : > { %v2143_v36 = vsub.f32 %v2123_v18, %v2139_v32  ;;  %v2138_v38 = vmul.f32 0.0625, %v2130_v35  ;;  %v2148_v39 = vmul.f32 %v2144_v30, %v2144_v30 }
 0xb93   : > { %v2127_v40 = vpop.xlane.xlu0 %2126 }
 0xb94   : > { %v2142_v41 = vsub.f32 %v2122_v25, %v2138_v38  ;;  %v2137_v42 = vmul.f32 0.0625, %v2127_v40  ;;  %v2158_v43 = vsel %vm288_vm2, %v2148_v39, 0.0  ;;  %v2147_v44 = vmul.f32 %v2143_v36, %v2143_v36 }
 0xb95   : > { %2159 = vadd.xlane.f32.xlu1 %v2158_v43 }
 0xb96   : > { %v2141_v45 = vsub.f32 %v2121_v21, %v2137_v42  ;;  %v2155_v46 = vsel %vm288_vm2, %v2147_v44, 0.0  ;;  %v2146_v47 = vmul.f32 %v2142_v41, %v2142_v41 }
 0xb97   : > { %2156 = vadd.xlane.f32.xlu0 %v2155_v46 }
 0xb98   : > { %v2152_v48 = vsel %vm288_vm2, %v2146_v47, 0.0  ;;  %v2145_v49 = vmul.f32 %v2141_v45, %v2141_v45 }
 0xb99   : > { %2153 = vadd.xlane.f32.xlu1 %v2152_v48 }
 0xb9a   : > { %v2149_v31 = vsel %vm288_vm2, %v2145_v49, 0.0 }
 0xb9b   : > { %2150 = vadd.xlane.f32.xlu0 %v2149_v31 }
 0xbaa   : > { %2199 = vperm.xlu1 %2644, %v2196_v50  }
 0xc1e   : > { %v2160_v51 = vpop.xlane.xlu1 %2159 }
 0xc1f   : > { %v2164_v52 = vmul.f32 0.0625, %v2160_v51 }
 0xc20   : > { %v2157_v53 = vpop.xlane.xlu0 %2156 }
 0xc21   : > { %v2168_v54 = vadd.f32 1e-05, %v2164_v52  ;;  %v2163_v34 = vmul.f32 0.0625, %v2157_v53 }
 0xc22   : > { %v2154_v37 = vpop.xlane.xlu1 %2153 }
 0xc23   : > { %2686 = vrsqrt.f32 %v2168_v54  ;;  %v2167_v55 = vadd.f32 1e-05, %v2163_v34  ;;  %v2162_v56 = vmul.f32 0.0625, %v2154_v37 }
 0xc24   : > { %v2151_v57 = vpop.xlane.xlu0 %2150 }
 0xc25   : > { %2688 = vrsqrt.f32 %v2167_v55  ;;  %v2166_v58 = vadd.f32 1e-05, %v2162_v56  ;;  %v2161_v59 = vmul.f32 0.0625, %v2151_v57 }
 0xc26   : > { %v2200_v24 = vpop.permute.xlu1 %2199 }
 0xc27   : > { %2690 = vrsqrt.f32 %v2166_v58  ;;  %v2165_v60 = vadd.f32 1e-05, %v2161_v59 }
 0xc29   : > { %2692 = vrsqrt.f32 %v2165_v60 }
 0xc30   : > { %v2687_v61 = vpop.eup %2686 }
 0xc31   : > { %v2176_v62 = vmul.f32 %v2687_v61, %v2144_v30 }
 0xc32   : > { %v2689_v10 = vpop.eup %2688 }
 0xc33   : > { %v2175_v63 = vmul.f32 %v2689_v10, %v2143_v36  ;;  %v2185_v0 = vmul.f32 %v2395_v11, %v2176_v62 }
 0xc34   : > { %v2691_v1 = vpop.eup %2690 }
 0xc35   : > { %v2174_v2 = vmul.f32 %v2691_v1, %v2142_v41  ;;  %v2194_v3 = vadd.f32 %v2396_v20, %v2185_v0  ;;  %v2184_v4 = vmul.f32 %v2395_v11, %v2175_v63 }
 0xc36   : > { %v2693_v14 = vpop.eup %2692 }
 0xc37   : > { %2617 = vmatpush3.xpose.msk.msra.mxu1 %vm288_vm2, %v2194_v3  ;;  %v2173_v15 = vmul.f32 %v2693_v14, %v2141_v45  ;;  %v2193_v5 = vadd.f32 %v2396_v20, %v2184_v4  ;;  %v2183_v6 = vmul.f32 %v2395_v11, %v2174_v2 }
 0xc38   : > { %2618 = vmatprep.subr.mxu1 %v2702_v16 }
 0xc39   : > { %v2192_v7 = vadd.f32 %v2396_v20, %v2183_v6  ;;  %v2182_v8 = vmul.f32 %v2395_v11, %v2173_v15 }
 0xc3b   : > { %2619 = vmatpush3.xpose.msk.msra.mxu1 %vm288_vm2, %v2193_v5  ;;  %v2191_v9 = vadd.f32 %v2396_v20, %v2182_v8 }
 0xc3c   : > { %2620 = vmatprep.subr.mxu1 %v2702_v16 }
 0xc3f   : > { %2621 = vmatpush3.xpose.msk.msra.mxu1 %vm288_vm2, %v2192_v7 }
 0xc40   : > { %2622 = vmatprep.subr.mxu1 %v2702_v16 }
 0xc43   : > { %2623 = vmatpush3.xpose.msk.msra.mxu1 %vm288_vm2, %v2191_v9 }
 0xc46   : > { %2625 = vmatmul.mubr.msk.f32.vlgmr.msra.gmra.mxu1 %vm288_vm2, %v2195_v12 }
 0xd06   : > { %v2283_v23 = vpop.f32.mrf.mxu1 }
 0xd07   : > { %v2284_v13 = vadd.f32 %v2283_v23, %v2200_v24 }
 0xd08   : > { %v2626_v16 = vpop.f32.mrf.mxu1 }
 0xd09   : > { %2288 = vst.msk [vmem:[%s168_s29] sm:$0x1] %vm2287_vm6, %v2284_v13 }
 0xd0a PF: > { %s13_s12 = sadd.s32 1, %s2700_s12  }
 0xd0b   : > { %p10_p5 = scmp.ge.s32.totalorder %s13_s12, 4  }
 0xd0d   :  { %12 = sbr.rel (!%p10_p5) target bundleno = 1 (0x1), region = 62 }

</bundles_post_ra>
